<compile_context>
chip_gen: v7x
topology: tpu7x:2x2x1
jax: 0.10.0
libtpu: 0.0.40
codegen_flags: <defaults>
</compile_context>

<pallas_src>
import functools

import jax
import jax.numpy as jnp
from jax.experimental import pallas as pl
from jax.experimental.pallas import tpu as pltpu


def _make_divisible(v, divisor, min_value=None):
    if min_value is None:
        min_value = divisor
    new_v = max(min_value, int(v + divisor / 2) // divisor * divisor)
    if new_v < 0.9 * v:
        new_v += divisor
    return new_v


# ----------------------------- Pallas kernel ------------------------------ #

def se_kernel(x_ref, w1_ref, b1_ref, w2_ref, b2_ref, out_ref, *, inv_hw):
    """x_ref: (bB, C, HW) block.  Weights: (C,Hd),(1,Hd),(Hd,C),(1,C)."""
    # Upcast immediately so all math is f32 regardless of the I/O dtype
    # (bf16 I/O path; also keeps v5e off its missing bf16 VPU/EUP paths).
    xf = x_ref[...].astype(jnp.float32)                         # (bB, C, HW)

    # Squeeze: global average pool over the lane-dense spatial axis (XLU reduce),
    # accumulated in f32.
    pooled = jnp.sum(xf, axis=-1) * inv_hw                      # (bB, C)

    # Excitation MLP: Linear -> SiLU -> Linear -> Sigmoid (f32 accumulation on MXU).
    h = jnp.dot(pooled, w1_ref[...].astype(jnp.float32),
                preferred_element_type=jnp.float32) + b1_ref[...].astype(jnp.float32)
    h = h * jax.nn.sigmoid(h)                                   # SiLU
    y = jnp.dot(h, w2_ref[...].astype(jnp.float32),
                preferred_element_type=jnp.float32) + b2_ref[...].astype(jnp.float32)
    y = jax.nn.sigmoid(y)                                       # (bB, C)

    # Scale: broadcast the per-channel gate across the 256-wide spatial lanes.
    out_ref[...] = (xf * y[:, :, None]).astype(out_ref.dtype)


# ------------------------------ JAX wrapper -------------------------------- #

def se_layer(x, w1, b1, w2, b2, *, block_b=64):
    """x: (B, C, H, W) f32 or bf16.  w1:(C,Hd) b1:(1,Hd) w2:(Hd,C) b2:(1,C).

    Weights are PyTorch Linear weights pre-transposed to (in, out).
    """
    B, C, H, W = x.shape
    HW = H * W
    Hd = w1.shape[1]

    # Collapse of the two trailing contiguous dims: layout-only reshape in
    # row-major, no HBM copy.  The 256-wide last dim is the lane dimension.
    x3 = x.reshape(B, C, HW)

    itemsize = jnp.dtype(x.dtype).itemsize
    bytes_per_row = C * HW * itemsize                 # one batch row of x/out

    # Tile sizing:
    #  * as large as possible (>=512 KiB tiles reach the HBM-roofline regime),
    #  * but in+out blocks are each double-buffered, so 4*block_b*bytes_per_row
    #    must stay well under the 32 MiB scoped-VMEM default (v7x: 64 MiB chip),
    #  * and keep the grid at >= 2 steps so v7x can shard over its 2 TCs.
    vmem_budget = 24 * 1024 * 1024
    block_b = max(1, min(block_b, B, vmem_budget // (4 * bytes_per_row)))
    if B > 1:
        block_b = min(block_b, pl.cdiv(B, 2))
    grid = (pl.cdiv(B, block_b),)
    # If B % block_b != 0 the padded tail rows flow through SiLU/sigmoid on
    # garbage data; harmless — each output row depends only on its own input
    # row and padded output rows are discarded by Pallas.

    kernel = functools.partial(se_kernel, inv_hw=1.0 / float(HW))

    cost = pl.CostEstimate(
        flops=int(2 * B * C * Hd * 2 + 2 * B * C * HW),
        transcendentals=int(B * (C + Hd)),
        bytes_accessed=int(2 * B * C * HW * itemsize
                           + (C * Hd + Hd + Hd * C + C) * 4),
    )

    out = pl.pallas_call(
        kernel,
        out_shape=jax.ShapeDtypeStruct((B, C, HW), x.dtype),
        grid_spec=pltpu.PrefetchScalarGridSpec(
            num_scalar_prefetch=0,
            grid=grid,
            in_specs=[
                pl.BlockSpec((block_b, C, HW), lambda i: (i, 0, 0)),  # x block
                pl.BlockSpec((C, Hd), lambda i: (0, 0)),              # w1 (resident)
                pl.BlockSpec((1, Hd), lambda i: (0, 0)),              # b1
                pl.BlockSpec((Hd, C), lambda i: (0, 0)),              # w2
                pl.BlockSpec((1, C), lambda i: (0, 0)),               # b2
            ],
            out_specs=pl.BlockSpec((block_b, C, HW), lambda i: (i, 0, 0)),
        ),
        compiler_params=pltpu.CompilerParams(
            dimension_semantics=("parallel",),      # v7x: shard batch over both TCs
        ),
        cost_estimate=cost,
    )(x3, w1, b1, w2, b2)
    return out.reshape(B, C, H, W)


# -------------------------- pure-JAX reference ------------------------------ #

def reference_se(x, w1, b1, w2, b2):
    pooled = jnp.mean(x, axis=(2, 3))                         # (B, C)
    h = pooled @ w1 + b1
    h = h * jax.nn.sigmoid(h)                                 # SiLU
    y = jax.nn.sigmoid(h @ w2 + b2)                           # (B, C)
    return x * y[:, :, None, None]


# --------------------------------- main ------------------------------------ #

if __name__ == "__main__":
    key = jax.random.PRNGKey(0)

    # SELayer(inp=64, oup=64, reduction=4): hidden = _make_divisible(64//4, 8) = 16
    C = 64
    inp = oup = C
    reduction = 4
    Hd = _make_divisible(inp // reduction, 8)
    H = W = 16

    k_x, k_w1, k_b1, k_w2, k_b2, k_x2 = jax.random.split(key, 6)
    sc = 0.1
    # PyTorch Linear weights are (out, in); pass transposed (in, out) to the kernel.
    w1 = sc * jax.random.normal(k_w1, (oup, Hd), jnp.float32)      # fc[0].weight.T
    b1 = sc * jax.random.normal(k_b1, (1, Hd), jnp.float32)        # fc[0].bias
    w2 = sc * jax.random.normal(k_w2, (Hd, oup), jnp.float32)      # fc[2].weight.T
    b2 = sc * jax.random.normal(k_b2, (1, oup), jnp.float32)       # fc[2].bias

    # ---- f32 path (small batch; exercises the >=2-step grid with block_b=1) ----
    B1 = 2
    x = jax.random.normal(k_x, (B1, C, H, W), jnp.float32)
    out = se_layer(x, w1, b1, w2, b2)
    jax.block_until_ready(out)
    ref = reference_se(x, w1, b1, w2, b2)
    assert out.shape == (B1, C, H, W)
    assert jnp.allclose(out, ref, atol=1e-5, rtol=1e-5), float(jnp.max(jnp.abs(out - ref)))

    # ---- bf16 I/O path (larger batch; exercises multi-row blocks, f32 math) ----
    B2 = 32
    x2_f32 = jax.random.normal(k_x2, (B2, C, H, W), jnp.float32)
    x2_bf = x2_f32.astype(jnp.bfloat16)
    out_bf = se_layer(x2_bf, w1, b1, w2, b2)
    jax.block_until_ready(out_bf)
    ref_bf = reference_se(x2_bf.astype(jnp.float32), w1, b1, w2, b2)
    assert out_bf.dtype == jnp.bfloat16
    max_err = float(jnp.max(jnp.abs(out_bf.astype(jnp.float32) - ref_bf)))
    assert max_err < 3e-2, max_err

    print("KERNEL_OK")
</pallas_src>

<mosaic_0001>
module attributes {stable_mosaic.version = 11 : i64} {
  func.func @se_kernel(%arg0: i32, %arg1: memref<1x64x256xf32, #tpu.memory_space<vmem>>, %arg2: memref<64x16xf32, #tpu.memory_space<vmem>>, %arg3: memref<1x16xf32, #tpu.memory_space<vmem>>, %arg4: memref<16x64xf32, #tpu.memory_space<vmem>>, %arg5: memref<1x64xf32, #tpu.memory_space<vmem>>, %arg6: memref<1x64x256xf32, #tpu.memory_space<vmem>>) attributes {dimension_semantics = [#tpu.dimension_semantics<parallel>], iteration_bounds = array<i64: 2>, scalar_prefetch = 0 : i64, scratch_operands = 0 : i64, tpu.core_type = #tpu.core_type<tc>, window_params = [{transform_indices = @transform_0, window_bounds = array<i64: 1, 64, 256>}, {pipeline_mode = #tpu.pipeline_mode<synchronous>, transform_indices = @transform_1, window_bounds = array<i64: 64, 16>}, {pipeline_mode = #tpu.pipeline_mode<synchronous>, transform_indices = @transform_2, window_bounds = array<i64: 1, 16>}, {pipeline_mode = #tpu.pipeline_mode<synchronous>, transform_indices = @transform_3, window_bounds = array<i64: 16, 64>}, {pipeline_mode = #tpu.pipeline_mode<synchronous>, transform_indices = @transform_4, window_bounds = array<i64: 1, 64>}, {transform_indices = @transform_5, window_bounds = array<i64: 1, 64, 256>}]} {
    %c0 = arith.constant 0 : index
    %c0_0 = arith.constant 0 : index
    %c0_1 = arith.constant 0 : index
    %0 = vector.load %arg1[%c0, %c0_0, %c0_1] : memref<1x64x256xf32, #tpu.memory_space<vmem>>, vector<1x64x256xf32>
    %cst = arith.constant dense<0.000000e+00> : vector<1x64xf32>
    %1 = vector.multi_reduction <add>, %0, %cst [2] : vector<1x64x256xf32> to vector<1x64xf32>
    %cst_2 = arith.constant 3.906250e-03 : f32
    %2 = vector.broadcast %cst_2 : f32 to vector<1x64xf32>
    %3 = arith.mulf %1, %2 : vector<1x64xf32>
    %c0_3 = arith.constant 0 : index
    %c0_4 = arith.constant 0 : index
    %4 = vector.load %arg2[%c0_3, %c0_4] : memref<64x16xf32, #tpu.memory_space<vmem>>, vector<64x16xf32>
    %cst_5 = arith.constant dense<0.000000e+00> : vector<1x16xf32>
    %5 = tpu.matmul %3, %4, %cst_5 {dimension_numbers = #tpu.dot_dimension_numbers<[1], [0], [0], [1], [0, 0, 1, 1], [], []>} : vector<1x64xf32>, vector<64x16xf32>, vector<1x16xf32> -> vector<1x16xf32>
    %c0_6 = arith.constant 0 : index
    %c0_7 = arith.constant 0 : index
    %6 = vector.load %arg3[%c0_6, %c0_7] : memref<1x16xf32, #tpu.memory_space<vmem>>, vector<1x16xf32>
    %7 = arith.addf %5, %6 : vector<1x16xf32>
    %8 = arith.negf %7 : vector<1x16xf32>
    %9 = math.exp %8 : vector<1x16xf32>
    %cst_8 = arith.constant 1.000000e+00 : f32
    %10 = vector.broadcast %cst_8 : f32 to vector<1x16xf32>
    %11 = arith.addf %10, %9 : vector<1x16xf32>
    %12 = arith.divf %10, %11 : vector<1x16xf32>
    %13 = arith.mulf %7, %12 : vector<1x16xf32>
    %c0_9 = arith.constant 0 : index
    %c0_10 = arith.constant 0 : index
    %14 = vector.load %arg4[%c0_9, %c0_10] : memref<16x64xf32, #tpu.memory_space<vmem>>, vector<16x64xf32>
    %cst_11 = arith.constant dense<0.000000e+00> : vector<1x64xf32>
    %15 = tpu.matmul %13, %14, %cst_11 {dimension_numbers = #tpu.dot_dimension_numbers<[1], [0], [0], [1], [0, 0, 1, 1], [], []>} : vector<1x16xf32>, vector<16x64xf32>, vector<1x64xf32> -> vector<1x64xf32>
    %c0_12 = arith.constant 0 : index
    %c0_13 = arith.constant 0 : index
    %16 = vector.load %arg5[%c0_12, %c0_13] : memref<1x64xf32, #tpu.memory_space<vmem>>, vector<1x64xf32>
    %17 = arith.addf %15, %16 : vector<1x64xf32>
    %18 = arith.negf %17 : vector<1x64xf32>
    %19 = math.exp %18 : vector<1x64xf32>
    %cst_14 = arith.constant 1.000000e+00 : f32
    %20 = vector.broadcast %cst_14 : f32 to vector<1x64xf32>
    %21 = arith.addf %20, %19 : vector<1x64xf32>
    %22 = arith.divf %20, %21 : vector<1x64xf32>
    %23 = vector.shape_cast %22 : vector<1x64xf32> to vector<1x64x1xf32>
    %24 = vector.broadcast %23 : vector<1x64x1xf32> to vector<1x64x256xf32>
    %25 = arith.mulf %0, %24 : vector<1x64x256xf32>
    %c0_15 = arith.constant 0 : index
    %c0_16 = arith.constant 0 : index
    %c0_17 = arith.constant 0 : index
    %26 = vector.load %arg6[%c0_15, %c0_16, %c0_17] : memref<1x64x256xf32, #tpu.memory_space<vmem>>, vector<1x64x256xf32>
    tpu.vector_store %arg6[%c0_15, %c0_16, %c0_17], %25 {strides = array<i32>} : memref<1x64x256xf32, #tpu.memory_space<vmem>>, vector<1x64x256xf32>,
    return
  }
  func.func @transform_0(%arg0: i32) -> (i32, i32, i32) {
    %c0_i32 = arith.constant 0 : i32
    %c0_i32_0 = arith.constant 0 : i32
    %c0_i32_1 = arith.constant 0 : i32
    return %arg0, %c0_i32, %c0_i32_0 : i32, i32, i32
  }
  func.func @transform_1(%arg0: i32) -> (i32, i32) {
    %c0_i32 = arith.constant 0 : i32
    %c0_i32_0 = arith.constant 0 : i32
    %c0_i32_1 = arith.constant 0 : i32
    return %c0_i32, %c0_i32_0 : i32, i32
  }
  func.func @transform_2(%arg0: i32) -> (i32, i32) {
    %c0_i32 = arith.constant 0 : i32
    %c0_i32_0 = arith.constant 0 : i32
    %c0_i32_1 = arith.constant 0 : i32
    return %c0_i32, %c0_i32_0 : i32, i32
  }
  func.func @transform_3(%arg0: i32) -> (i32, i32) {
    %c0_i32 = arith.constant 0 : i32
    %c0_i32_0 = arith.constant 0 : i32
    %c0_i32_1 = arith.constant 0 : i32
    return %c0_i32, %c0_i32_0 : i32, i32
  }
  func.func @transform_4(%arg0: i32) -> (i32, i32) {
    %c0_i32 = arith.constant 0 : i32
    %c0_i32_0 = arith.constant 0 : i32
    %c0_i32_1 = arith.constant 0 : i32
    return %c0_i32, %c0_i32_0 : i32, i32
  }
  func.func @transform_5(%arg0: i32) -> (i32, i32, i32) {
    %c0_i32 = arith.constant 0 : i32
    %c0_i32_0 = arith.constant 0 : i32
    %c0_i32_1 = arith.constant 0 : i32
    return %arg0, %c0_i32, %c0_i32_0 : i32, i32, i32
  }
}

</mosaic_0001>

<bundles_post_ra>
// kernel: tpu_custom_call.1
= control target key start
LH: loop header
LB: loop body
LE: loop exit
PB: predicated region body
PF: predicated region fallthrough
CT: control target
= control target key end

     0   :  { %10 = vsyncpa [#allocation3], 0  ;;  %s1248_s0 = inlined_call_operand.hbm [shape: f32[2,64,256], index: 0, kind: input, shape index: {}]   ;;  %s1249_s1 = inlined_call_operand.vmem [shape: f32[64,16], index: 1, kind: input, shape index: {}]   ;;  %s1250_s2 = inlined_call_operand.vmem [shape: f32[1,16], index: 2, kind: input, shape index: {}]   ;;  %s1251_s3 = inlined_call_operand.vmem [shape: f32[16,64], index: 3, kind: input, shape index: {}]   ;;  %s1252_s4 = inlined_call_operand.vmem [shape: f32[1,64], index: 4, kind: input, shape index: {}]   ;;  %s1253_s5 = inlined_call_operand.hbm [shape: f32[2,64,256], index: 5, kind: output, shape index: {}]  }
   0x1   :  { %12 = vsyncpa [#allocation3 + $0x1], 0 }
   0x2   :  { %13 = vsyncpa [#allocation4], 0 }
   0x3   :  { %15 = vsyncpa [#allocation4 + $0x1], 0  ;;  %s951_s18 = smov 0   ;;  %s953_s19 = smov 0  }
   0x4   :  { %s955_s20 = smov 0   ;;  %s957_s21 = smov 0  }
   0x5 LB: > { %s972_s22 = sadd.s32 4294967295, %s910_s21   ;;  %s680_s23 = sadd.s32 4294967294, %s910_s21   ;;  %s910_s21 = sphi %s957_s21, %s1266_s21   ;;  %s906_s20 = sphi %s955_s20, %s1265_s20   ;;  %s902_s19 = sphi %s953_s19, %s1264_s19   ;;  %s898_s18 = sphi %s951_s18, %s1263_s18  }
   0x6   : > { %s976_s24 = sadd.s32 1, %s910_s21   ;;  %s28_s25 = sadd.s32 1, %s906_s20 }
   0x7   : > { %s25_s26 = ssub.s32 %s910_s21, %s976_s24  ;;  %p35_p0 = scmp.ne.s32.totalorder %s906_s20, %s902_s19 }
   0x8   : > { %p26_p1 = scmp.eq.s32.totalorder %s25_s26, 0  ;;  %p36_p2 = scmp.eq.s32.totalorder %s910_s21, 0 }
   0x9   : > { %p41_p3 = scmp.ne.s32.totalorder %s902_s19, %s898_s18  ;;  %p42_p4 = scmp.eq.s32.totalorder %s972_s22, 0 }
   0xa   : > { %s988_s27 = scalar_select %p26_p1, %s906_s20, %s28_s25  }
   0xb   : > { %p990_p5 = por %p36_p2, %p35_p0  ;;  %p994_p6 = por %p42_p4, %p41_p3 }
   0xc   : > { %p149_p7 = scmp.eq.s32.totalorder %s972_s22, 1  ;;  %p155_p8 = scmp.eq.s32.totalorder %s680_s23, 1 }
   0xd   : > { %p765_p10 = scmp.lt.s32.totalorder %s910_s21, 2  ;;  %s187_s7 = sand.u32 1, %s906_s20  }
   0xe   : > { %p1001_p11 = por %p149_p7, %p35_p0  ;;  %p1005_p12 = por %p155_p8, %p41_p3 }
   0xf   : > { %s698_s8 = sshll.u32 %s910_s21, 11  ;;  %s683_s9 = sshll.u32 %s187_s7, 7 }
  0x10   : > { %s1257_s30 = scalar_select %p1001_p11, 1, 0 }
  0x11   : > { %s1258_s6 = scalar_select %p1005_p12, 1, 0 }
  0x12   : > { %s1014_s12 = scalar_lea.hbm %s1248_s0, %s698_s8  ;;  %s191_s13 = scalar_lea.vmem [#allocation2], %s683_s9 }
  0x13   : > { %s198_s14 = sshll.u32 %s191_s13, 4  ;;  %p1018_p13 = pnand %p765_p10, %p990_p5  ;;  %s1022_s14 = int_to_ptr.vmem [resolvable:$true] %s198_s14 }
  0x14   : > { %s1024_s16 = scalar_lea.sflag [#allocation3], %s187_s7  ;;  %s814_s17 = scalar_lea.hbm %s1014_s12, 2048 }
  0x15   : > { %p815_p0 = scmp.ne.s32.totalorder %s1014_s12, %s814_s17  ;;  %p816_p1 = pneg %p1018_p13 }
  0x16   : > { %s819_s26 = scalar_lea.hbm %s1248_s0, 4096  ;;  %p820_p4 = scmp.lt.u32.totalorder %s1014_s12, %s1248_s0 }
  0x17   : > { %p817_p2 = pnand %p816_p1, %p815_p0  ;;  %p821_p5 = scmp.lt.u32.totalorder %s819_s26, %s814_s17 }
  0x18   : > { %p823_p8 = scmp.lt.u32.totalorder %s814_s17, %s1014_s12 }
  0x19   : > { %p818_p3 = pneg %p817_p2  ;;  %p822_p7 = por %p821_p5, %p820_p4 }
  0x1b   : > { %p824_p10 = por %p823_p8, %p822_p7 }
  0x1d   : > { %p825_p9 = pnand %p824_p10, %p818_p3 }
  0x1f   : > { %828 = shalt.err (!%p825_p9)
}
  0x20   : > { %s829_s7 = scalar_lea.vmem %s1022_s14, 2048  ;;  %s912_s9 = smov [#allocation2]  }
  0x21   : > { %p830_p0 = scmp.ne.s32.totalorder %s1022_s14, %s829_s7  ;;  %s834_s10 = sshll.u32 %s912_s9, 4  ;;  %s835_s10 = int_to_ptr.vmem [resolvable:$false] %s834_s10 }
  0x22   : > { %s836_s11 = scalar_lea.vmem %s835_s10, 4096  ;;  %p837_p11 = scmp.lt.s32.totalorder %s1022_s14, %s835_s10 }
  0x23   : > { %p832_p2 = pnand %p830_p0, %p816_p1  ;;  %p838_p4 = scmp.lt.s32.totalorder %s836_s11, %s829_s7 }
  0x25   : > { %p833_p12 = pneg %p832_p2  ;;  %p839_p5 = por %p838_p4, %p837_p11 }
  0x27   : > { %p840_p7 = pnand %p839_p5, %p833_p12 }
  0x29   : > { %843 = shalt.err (!%p840_p7)
}
  0x2a   : > { %s913_s13 = smov 256   ;;  %s914_s17 = smov 16  }
  0x2b   : > { %760 = dma.hbm_to_vmem [thread:$0]  (!%p1018_p13), %s1014_s12, 2048, %s1022_s14, %s1024_s16, %s913_s13, %s913_s13, %s914_s17  }
  0x2c   : > { %p686_p9 = scmp.ge.s32.totalorder %s910_s21, 1  ;;  %p206_p1 = scmp.lt.s32.totalorder %s910_s21, 3 }
  0x2e   : > { %p207_p3 = pnand %p686_p9, %p206_p1 }
  0x2f   : > { %s1055_s23 = sand.u32 (!%p207_p3), 1, %s902_s19  }
  0x30   : > { %210 = sbr.rel (%p207_p3) target bundleno = 851 (0x353), region = 40  ;;  %s687_s25 = sshll.u32 (!%p207_p3), %s1055_s23, 7 }
  0x31   : > { %s213_s26 = scalar_lea.sflag (!%p207_p3), [#allocation3], %s1055_s23  ;;  %s216_s28 = scalar_lea.vmem (!%p207_p3), [#allocation2], %s687_s25 }
  0x37   : > { %889 = dma.done.wait (%p994_p6), %s213_s26, 2048  }
  0x38   : > { %891 = vsyncadd (%p994_p6), %s213_s26, 4294965248  ;;  %v1065_v0 = vld [vmem:[%s216_s28] sm:$0xff]  ;;  %v1067_v1 = vld [vmem:[%s216_s28 + $0x8] sm:$0xff]  ;;  %v915_v27 = vmov 0.0|0.0   ;;  %vm916_vm0 = vmmov 0   ;;  %v917_v37 = vmov 0.0   ;;  %v308_v38 = vlaneseq }
  0x39   : > { %v1069_v2 = vld [vmem:[%s216_s28 + $0x20] sm:$0xff]  ;;  %v259_v3 = vadd.f32 %v1067_v1, %v1065_v0  ;;  %v1073_v4 = vld [vmem:[%s216_s28 + $0x28] sm:$0xff]  ;;  %v1075_v5 = vld [vmem:[%s216_s28 + $0x10] sm:$0xff]  ;;  %738 = vmatprep.subr.bf16.mxu0 %v915_v27  ;;  %750 = vmatprep.subr.bf16.mxu1 %v915_v27  ;;  %vm319_vm1 = vcmask 130112   ;;  %vm326_vm2 = vcmask 195712   ;;  %vm333_vm3 = vcmask 261312  }
  0x3a   : > { %v1077_v6 = vld [vmem:[%s216_s28 + $0x18] sm:$0xff]  ;;  %v265_v7 = vadd.f32 %v1073_v4, %v1069_v2  ;;  %v1081_v8 = vld [vmem:[%s216_s28 + $0x30] sm:$0xff]  ;;  %v1089_v12 = vld [vmem:[%s216_s28 + $0x40] sm:$0xff]  ;;  %728 = vmatprep.mubr.msk.f32.mxu0 %vm916_vm0, %v917_v37  ;;  %735 = vmatprep.mubr.msk.f32.mxu1 %vm916_vm0, %v917_v37  ;;  %v309_v39 = vand.u32 127, %v308_v38  ;;  %v1137_v40 = vshrl.u32 %v308_v38, 7  ;;  %vm340_vm4 = vcmask 326912  }
  0x3b   : > { %v1083_v9 = vld [vmem:[%s216_s28 + $0x38] sm:$0xff]  ;;  %260 = vadd.xlane.f32.xlu0 %v259_v3  ;;  %v262_v10 = vadd.f32 %v1077_v6, %v1075_v5  ;;  %v1091_v13 = vld [vmem:[%s216_s28 + $0x48] sm:$0xff]  ;;  %v1093_v14 = vld [vmem:[%s216_s28 + $0x50] sm:$0xff]  ;;  %vm347_vm5 = vcmask 392512   ;;  %vm354_vm6 = vcmask 458112   ;;  %vm361_vm7 = vcmask 523712  }
  0x3c   : > { %266 = vadd.xlane.f32.xlu1 %v265_v7  ;;  %v268_v11 = vadd.f32 %v1083_v9, %v1081_v8  ;;  %v1095_v15 = vld [vmem:[%s216_s28 + $0x58] sm:$0xff]  ;;  %v271_v16 = vadd.f32 %v1091_v13, %v1089_v12  ;;  %v1101_v18 = vld [vmem:[%s216_s28 + $0x60] sm:$0xff]  ;;  %v1103_v19 = vld [vmem:[%s216_s28 + $0x68] sm:$0xff]  ;;  %v314_v41 = vadd.s32 4294967288, %v309_v39  ;;  %v321_v43 = vadd.s32 4294967280, %v309_v39  ;;  %s1167_s13 = scalar_lea.vmem [#allocation5], %s687_s25 }
  0x3d   : > { %v274_v17 = vadd.f32 %v1095_v15, %v1093_v14  ;;  %v1105_v20 = vld [vmem:[%s216_s28 + $0x70] sm:$0xff]  ;;  %v1107_v21 = vld [vmem:[%s216_s28 + $0x78] sm:$0xff]  ;;  %v277_v22 = vadd.f32 %v1103_v19, %v1101_v18  ;;  %v291_v24 = vld [vmem:[%s1249_s1] sm:$0xff]  ;;  %v328_v44 = vadd.s32 4294967272, %v309_v39  ;;  %v312_v46 = vsub.s32 %v309_v39, %v1137_v40  ;;  %s699_s25 = sshll.u32 %s972_s22, 11  ;;  %s607_s17 = sshll.u32 %s1167_s13, 4  ;;  %s1200_s17 = int_to_ptr.vmem [resolvable:$true] %s607_s17 }
  0x3e   : > { %v280_v23 = vadd.f32 %v1107_v21, %v1105_v20  ;;  %v292_v25 = vld [vmem:[%s1249_s1 + $0x8] sm:$0xff]  ;;  %v293_v28 = vld [vmem:[%s1249_s1 + $0x10] sm:$0xff]  ;;  %v294_v29 = vld [vmem:[%s1249_s1 + $0x18] sm:$0xff]  ;;  %v317_v48 = vsub.s32 %v314_v41, %v1137_v40  ;;  %v335_v49 = vadd.s32 4294967264, %v309_v39  ;;  %v324_v50 = vsub.s32 %v321_v43, %v1137_v40  ;;  %s1198_s29 = scalar_lea.hbm %s1253_s5, %s699_s25  ;;  %s594_s22 = scalar_lea.sflag [#allocation4], %s1055_s23 }
  0x3f   : > { %263 = vadd.xlane.f32.xlu0 %v262_v10  ;;  %v739_v26 = vpack.c.bf16 %v292_v25, %v291_v24  ;;  %v742_v30 = vpack.c.bf16 %v294_v29, %v293_v28  ;;  %v295_v31 = vld [vmem:[%s1249_s1 + $0x20] sm:$0xff]  ;;  %v296_v32 = vld [vmem:[%s1249_s1 + $0x28] sm:$0xff]  ;;  %v297_v34 = vld [vmem:[%s1249_s1 + $0x30] sm:$0xff]  ;;  %v331_v53 = vsub.s32 %v328_v44, %v1137_v40  ;;  %v342_v54 = vadd.s32 4294967256, %v309_v39  ;;  %s844_s12 = scalar_lea.vmem %s1200_s17, 2048  ;;  %p1260_p11 = scmp.ne.s32.totalorder %s1257_s30, 0 }
  0x40   : > { %269 = vadd.xlane.f32.xlu1 %v268_v11  ;;  %v745_v33 = vpack.c.bf16 %v296_v32, %v295_v31  ;;  %v298_v35 = vld [vmem:[%s1249_s1 + $0x38] sm:$0xff]  ;;  %v338_v60 = vsub.s32 %v335_v49, %v1137_v40  ;;  %v349_v61 = vadd.s32 4294967248, %v309_v39  ;;  %v356_v10 = vadd.s32 4294967240, %v309_v39  ;;  %v443_v39 = vld [vmem:[%s1251_s3] sm:$0xff]  ;;  %v444_v41 = vld [vmem:[%s1251_s3 + $0x8] sm:$0xff]  ;;  %p845_p6 = scmp.ne.s32.totalorder %s1200_s17, %s844_s12  ;;  %s918_s14 = smov [#allocation5]  }
  0x41   : > { %740 = vmatpush3.bf16.msra.mxu0 %v739_v26  ;;  %v748_v36 = vpack.c.bf16 %v298_v35, %v297_v34  ;;  %v345_v7 = vsub.s32 %v342_v54, %v1137_v40  ;;  %vm363_vm8 = vcmask 523264   ;;  %v299_v43 = vld [vmem:[%s1250_s2] sm:$0x1]  ;;  %vm446_vm9 = vcmask 130048   ;;  %s848_s15 = sshll.u32 %s918_s14, 4  ;;  %s849_s15 = int_to_ptr.vmem [resolvable:$false] %s848_s15 }
  0x42   : > { %741 = vmatprep.subr.bf16.mxu0 %v915_v27  ;;  %v352_v26 = vsub.s32 %v349_v61, %v1137_v40  ;;  %v359_v29 = vsub.s32 %v356_v10, %v1137_v40  ;;  %p846_p12 = pnand %p845_p6, %p1260_p11  ;;  %s850_s16 = scalar_lea.vmem %s849_s15, 4096 }
  0x43   : > { %272 = vadd.xlane.f32.xlu0 %v271_v16  ;;  %p851_p8 = scmp.lt.s32.totalorder %s1200_s17, %s849_s15  ;;  %p852_p10 = scmp.lt.s32.totalorder %s850_s16, %s844_s12 }
  0x44   : > { %275 = vadd.xlane.f32.xlu1 %v274_v17  ;;  %p847_p13 = pneg %p846_p12 }
  0x45   : > { %743 = vmatpush3.bf16.msra.mxu0 %v742_v30  ;;  %p853_p0 = por %p852_p10, %p851_p8 }
  0x46   : > { %744 = vmatprep.subr.bf16.mxu0 %v915_v27 }
  0x47   : > { %278 = vadd.xlane.f32.xlu0 %v277_v22  ;;  %p854_p2 = pnand %p853_p0, %p847_p13 }
  0x48   : > { %281 = vadd.xlane.f32.xlu1 %v280_v23 }
  0x49   : > { %746 = vmatpush3.bf16.msra.mxu0 %v745_v33 }
  0x4a   : > { %747 = vmatprep.subr.bf16.mxu0 %v915_v27 }
  0x4d   : > { %749 = vmatpush3.bf16.msra.mxu0 %v748_v36 }
  0xc8   : > { %v261_v42 = vpop.xlane.xlu0 %260 }
  0xc9   : > { %v267_v45 = vpop.xlane.xlu1 %266  ;;  %v283_v47 = vmul.f32 0.00390625, %v261_v42  ;;  %v751_v42 = vpack.c.bf16 %v444_v41, %v443_v39 }
  0xca   : > { %v285_v51 = vmul.f32 0.00390625, %v267_v45 }
  0xcb   : > { %v313_v58 = vrot.slane %v283_v47, %v312_v46  ;;  %752 = vmatpush3.bf16.msra.mxu1 %v751_v42 }
  0xcc   : > { %v264_v52 = vpop.xlane.xlu0 %263  ;;  %v325_v62 = vrot.slane %v285_v51, %v324_v50 }
  0xcd   : > { %v284_v55 = vmul.f32 0.00390625, %v264_v52  ;;  %v270_v56 = vpop.xlane.xlu1 %269  ;;  %v445_v52 = vld [vmem:[%s1252_s4] sm:$0x1] }
  0xce   : > { %v286_v57 = vmul.f32 0.00390625, %v270_v56 }
  0xcf   : > { %v318_v59 = vrot.slane %v284_v55, %v317_v48 }
  0xd0   : > { %v332_v63 = vrot.slane %v286_v57, %v331_v53  ;;  %v273_v3 = vpop.xlane.xlu0 %272 }
  0xd1   : > { %v320_v11 = vsel %vm319_vm1, %v318_v59, %v313_v58  ;;  %v287_v16 = vmul.f32 0.00390625, %v273_v3  ;;  %v276_v17 = vpop.xlane.xlu1 %275  ;;  %v528_v59 = vsub.s32 0, %v1137_v40 }
  0xd2   : > { %v327_v22 = vsel %vm326_vm2, %v325_v62, %v320_v11  ;;  %v288_v23 = vmul.f32 0.00390625, %v276_v17 }
  0xd3   : > { %v334_v24 = vsel %vm333_vm3, %v332_v63, %v327_v22  ;;  %v339_v25 = vrot.slane %v287_v16, %v338_v60 }
  0xd4   : > { %v346_v27 = vrot.slane %v288_v23, %v345_v7  ;;  %v279_v28 = vpop.xlane.xlu0 %278 }
  0xd5   : > { %v341_v30 = vsel %vm340_vm4, %v339_v25, %v334_v24  ;;  %v289_v31 = vmul.f32 0.00390625, %v279_v28  ;;  %v282_v32 = vpop.xlane.xlu1 %281 }
  0xd6   : > { %v290_v33 = vmul.f32 0.00390625, %v282_v32  ;;  %v348_v35 = vsel %vm347_vm5, %v346_v27, %v341_v30 }
  0xd7   : > { %v353_v34 = vrot.slane %v289_v31, %v352_v26 }
  0xd8   : > { %v360_v36 = vrot.slane %v290_v33, %v359_v29 }
  0xd9   : > { %v355_v37 = vsel %vm354_vm6, %v353_v34, %v348_v35 }
  0xda   : > { %v362_v38 = vsel %vm361_vm7, %v360_v36, %v355_v37 }
  0xdb   : > { %729 = vmatmul.mubr.msk.f32.vlgmr.msra.gmra.mrb[0].mxu0 %vm363_vm8, %v362_v38 }
 0x1ae   : > { %v432_v44 = vpop.f32.mrb[0].mxu0 }
 0x1af   : > { %v433_v45 = vadd.f32 %v432_v44, %v299_v43  ;;  %v730_v46 = vpop.f32.mrb[1].mxu0 }
 0x1b1   : > { %v690_v47 = vmul.f32 -1.442695, %v433_v45 }
 0x1b3   : > { %806 = vpow2.f32 %v690_v47 }
 0x1bd   : > { %v807_v48 = vpop.eup %806 }
 0x1be   : > { %v439_v49 = vadd.f32 1.0, %v807_v48 }
 0x1c0   : > { %808 = vrcp.f32 %v439_v49 }
 0x1ca   : > { %v809_v50 = vpop.eup %808 }
 0x1cb   : > { %v442_v51 = vmul.f32 %v809_v50, %v433_v45 }
 0x1cd   : > { %736 = vmatmul.mubr.msk.f32.vlgmr.msra.gmra.mrb[0].mxu1 %vm446_vm9, %v442_v51 }
 0x2a0   : > { %v516_v53 = vpop.f32.mrb[0].mxu1 }
 0x2a1   : > { %v517_v54 = vadd.f32 %v516_v53, %v445_v52  ;;  %v737_v55 = vpop.f32.mrb[1].mxu1 }
 0x2a3   : > { %v692_v56 = vmul.f32 -1.442695, %v517_v54 }
 0x2a5   : > { %810 = vpow2.f32 %v692_v56 }
 0x2af   : > { %v811_v57 = vpop.eup %810 }
 0x2b0   : > { %v523_v58 = vadd.f32 1.0, %v811_v57 }
 0x2b2   : > { %812 = vrcp.f32 %v523_v58 }
 0x2bc   : > { %v813_v60 = vpop.eup %812 }
 0x2bd   : > { %v529_v61 = vrot.slane %v813_v60, %v528_v59 }
 0x2bf   : > { %535 = vbcast.lane.b32.xlu1 %v529_v61, 264  ;;  %531 = vbcast.lane.b32.xlu0 %v529_v61, 256 }
 0x2c3   : > { %539 = vbcast.lane.b32.xlu1 %v529_v61, 272  ;;  %547 = vbcast.lane.b32.xlu0 %v529_v61, 288 }
 0x2c7   : > { %543 = vbcast.lane.b32.xlu1 %v529_v61, 280  ;;  %555 = vbcast.lane.b32.xlu0 %v529_v61, 304 }
 0x2cb   : > { %551 = vbcast.lane.b32.xlu1 %v529_v61, 296 }
 0x2cf   : > { %559 = vbcast.lane.b32.xlu1 %v529_v61, 312 }
 0x331   : > { %v536_v62 = vpop.permute.xlu1 %535  ;;  %v532_v63 = vpop.permute.xlu0 %531 }
 0x332   : > { %v563_v3 = vmul.f32 %v536_v62, %v1075_v5  ;;  %v564_v7 = vmul.f32 %v536_v62, %v1077_v6  ;;  %v561_v10 = vmul.f32 %v532_v63, %v1065_v0  ;;  %v562_v40 = vmul.f32 %v532_v63, %v1067_v1 }
 0x334   : > { %579 = vst [vmem:[%s1167_s13 + $0x10] sm:$0xff] %v563_v3  ;;  %580 = vst [vmem:[%s1167_s13 + $0x18] sm:$0xff] %v564_v7 }
 0x335   : > { %577 = vst [vmem:[%s1167_s13] sm:$0xff] %v561_v10  ;;  %578 = vst [vmem:[%s1167_s13 + $0x8] sm:$0xff] %v562_v40  ;;  %v540_v5 = vpop.permute.xlu1 %539  ;;  %v548_v0 = vpop.permute.xlu0 %547 }
 0x336   : > { %v565_v1 = vmul.f32 %v540_v5, %v1069_v2  ;;  %v566_v6 = vmul.f32 %v540_v5, %v1073_v4  ;;  %v569_v11 = vmul.f32 %v548_v0, %v1089_v12  ;;  %v570_v16 = vmul.f32 %v548_v0, %v1091_v13 }
 0x338   : > { %581 = vst [vmem:[%s1167_s13 + $0x20] sm:$0xff] %v565_v1  ;;  %582 = vst [vmem:[%s1167_s13 + $0x28] sm:$0xff] %v566_v6 }
 0x339   : > { %585 = vst [vmem:[%s1167_s13 + $0x40] sm:$0xff] %v569_v11  ;;  %586 = vst [vmem:[%s1167_s13 + $0x48] sm:$0xff] %v570_v16  ;;  %v544_v17 = vpop.permute.xlu1 %543  ;;  %v556_v22 = vpop.permute.xlu0 %555 }
 0x33a   : > { %v567_v2 = vmul.f32 %v544_v17, %v1081_v8  ;;  %v568_v23 = vmul.f32 %v544_v17, %v1083_v9  ;;  %v573_v4 = vmul.f32 %v556_v22, %v1101_v18  ;;  %v574_v12 = vmul.f32 %v556_v22, %v1103_v19 }
 0x33c   : > { %583 = vst [vmem:[%s1167_s13 + $0x30] sm:$0xff] %v567_v2  ;;  %584 = vst [vmem:[%s1167_s13 + $0x38] sm:$0xff] %v568_v23 }
 0x33d   : > { %589 = vst [vmem:[%s1167_s13 + $0x60] sm:$0xff] %v573_v4  ;;  %590 = vst [vmem:[%s1167_s13 + $0x68] sm:$0xff] %v574_v12  ;;  %v552_v13 = vpop.permute.xlu1 %551 }
 0x33e   : > { %v571_v24 = vmul.f32 %v552_v13, %v1093_v14  ;;  %v572_v25 = vmul.f32 %v552_v13, %v1095_v15 }
 0x340   : > { %587 = vst [vmem:[%s1167_s13 + $0x50] sm:$0xff] %v571_v24  ;;  %588 = vst [vmem:[%s1167_s13 + $0x58] sm:$0xff] %v572_v25 }
 0x341   : > { %v560_v8 = vpop.permute.xlu1 %559 }
 0x342   : > { %v575_v9 = vmul.f32 %v560_v8, %v1105_v20  ;;  %v576_v14 = vmul.f32 %v560_v8, %v1107_v21 }
 0x344   : > { %591 = vst [vmem:[%s1167_s13 + $0x70] sm:$0xff] %v575_v9  ;;  %592 = vst [vmem:[%s1167_s13 + $0x78] sm:$0xff] %v576_v14 }
 0x345   : > { %857 = shalt.err (!%p854_p2)
}
 0x346   : > { %s858_s8 = scalar_lea.hbm %s1198_s29, 2048  ;;  %s862_s10 = scalar_lea.hbm %s1253_s5, 4096 }
 0x347   : > { %p859_p4 = scmp.ne.s32.totalorder %s1198_s29, %s858_s8  ;;  %p863_p9 = scmp.lt.u32.totalorder %s1198_s29, %s1253_s5 }
 0x348   : > { %p864_p1 = scmp.lt.u32.totalorder %s862_s10, %s858_s8  ;;  %p866_p6 = scmp.lt.u32.totalorder %s858_s8, %s1198_s29 }
 0x349   : > { %p860_p5 = pnand %p859_p4, %p1260_p11 }
 0x34a   : > { %p865_p3 = por %p864_p1, %p863_p9 }
 0x34b   : > { %p861_p7 = pneg %p860_p5 }
 0x34c   : > { %p867_p12 = por %p866_p6, %p865_p3 }
 0x34e   : > { %p868_p13 = pnand %p867_p12, %p861_p7 }
 0x350   : > { %871 = shalt.err (!%p868_p13)
}
 0x351   : > { %s919_s25 = smov 256   ;;  %s920_s26 = smov 16  }
 0x352   : > { %755 = dma.vmem_to_hbm [thread:$0]  (%p1260_p11), %s1200_s17, 2048, %s1198_s29, %s594_s22, %s919_s25, %s919_s25, %s920_s26  }
 0x353 PF: > { %s622_s28 = sand.u32 1, %s898_s18   ;;  %p1261_p8 = scmp.ne.s32.totalorder %s1258_s6, 0 }
 0x354   : > { %p1262_p10 = scmp.ge.s32.totalorder %s910_s21, 2  ;;  %s623_s12 = scalar_lea.sflag [#allocation4], %s622_s28 }
 0x356   : > { %p762_p0 = pnand %p1262_p10, %p1261_p8 }
 0x358   : > { %893 = dma.done.wait (!%p762_p0), %s623_s12, 2048  }
 0x359   : > { %895 = vsyncadd (!%p762_p0), %s623_s12, 4294965248  ;;  %p18_p2 = scmp.ge.s32.totalorder %s976_s24, 4   ;;  %s1263_s18 = smov %s902_s19 }
 0x35a   : > { %s1264_s19 = smov %s906_s20  ;;  %s1265_s20 = smov %s988_s27 }
 0x35b   : > { %s1266_s21 = smov %s976_s24  ;;  %20 = sbr.rel (!%p18_p2) target bundleno = 5 (0x5), region = 85 }
 0x362   :  { %628 = vsyncpa [#allocation3], 1 }
 0x363   :  { %630 = vsyncpa [#allocation3 + $0x1], 1 }
 0x364   :  { %631 = vsyncpa [#allocation4], 1 }
 0x365   :  { %633 = vsyncpa [#allocation4 + $0x1], 1 }

</bundles_post_ra>
